<compile_context>
chip_gen: v6e
topology: v6e:2x2x1
jax: 0.10.0
libtpu: 0.0.40
codegen_flags: <defaults>
</compile_context>

<pallas_src>
import functools

import jax
import jax.numpy as jnp
from jax.experimental import pallas as pl
from jax.experimental.pallas import tpu as pltpu


# ---------------------------------------------------------------------------
# Fused kernel
# ---------------------------------------------------------------------------

def _fused_gru_cell_kernel(xn_ref, xp_ref, hn_ref,
                           w1x_ref, w1h_ref, b1_ref,
                           w2x_ref, w2h_ref, b2_ref,
                           o_ref, *, num_nodes):
    """One grid step = TB whole batch elements.

    Node-row layout (rows = batch*node, lanes = per-node features):
        xn_ref: (R, 1)      hn_ref: (R, H)
    Pair-row layout (rows = batch*node/2, lanes = two nodes' features):
        xp_ref: (Q, 2)      o_ref: (Q, 2H)
    Weights (resident across the whole grid, constant index_map):
        w1x: (1, 2H)  w1h: (H, 2H)  b1: (1, 2H)
        w2x: (1, H)   w2h: (H, H)   b2: (1, H)
    """
    R, H = hn_ref.shape
    N = num_nodes
    TB = R // N
    half = N // 2
    Q = R // 2

    xn = xn_ref[...]                                     # (R, 1)
    hn = hn_ref[...]                                     # (R, H)

    # ---- linear1 + sigmoid: one 2H-wide gate row per node (MXU + VPU + EUP).
    g = jax.nn.sigmoid(
        xn * w1x_ref[...]
        + jnp.dot(hn, w1h_ref[...], preferred_element_type=jnp.float32)
        + b1_ref[...])                                   # (R, 2H)

    # ---- torch.chunk on the flattened (B, N*2H) tensor splits by NODES:
    #   r <- gate rows of nodes [0, N/2), u <- gate rows of nodes [N/2, N),
    # and in pair layout each such gate row gates exactly one node pair, so
    # the chunk is a per-batch-element row slice (leading-dim reshapes only,
    # lane dimension untouched).
    g3 = g.reshape(TB, N, 2 * H)
    r_pair = g3[:, :half, :].reshape(Q, 2 * H)           # (Q, 2H)
    u_pair = g3[:, half:, :].reshape(Q, 2 * H)           # (Q, 2H)

    # ---- Even / odd node rows of h (pair row q <-> nodes 2q, 2q+1), rebuilt
    # on-chip from the single node-layout VMEM block via strided sublane
    # loads: h is never read from HBM a second time.
    h_ev = hn_ref[pl.ds(0, Q, stride=2), :]              # (Q, H) nodes 0,2,4,...
    h_od = hn_ref[pl.ds(1, Q, stride=2), :]              # (Q, H) nodes 1,3,5,...

    xp = xp_ref[...]                                     # (Q, 2)
    w2x = w2x_ref[...]                                   # (1, H)
    w2h = w2h_ref[...]                                   # (H, H)
    b2 = b2_ref[...]                                     # (1, H)

    # ---- linear2 + tanh, one lane-half (= one node of the pair) at a time,
    # using the plain (H, H) weight block (no block-diagonal zero padding).
    rh_ev = r_pair[:, :H] * h_ev                         # (Q, H)
    rh_od = r_pair[:, H:] * h_od                         # (Q, H)
    c_ev = jnp.tanh(xp[:, 0:1] * w2x
                    + jnp.dot(rh_ev, w2h, preferred_element_type=jnp.float32)
                    + b2)                                # (Q, H)
    c_od = jnp.tanh(xp[:, 1:2] * w2x
                    + jnp.dot(rh_od, w2h, preferred_element_type=jnp.float32)
                    + b2)                                # (Q, H)

    # ---- gate update, stored straight in the flat HBM layout (pair == flat).
    u_ev = u_pair[:, :H]
    u_od = u_pair[:, H:]
    o_ref[:, :H] = u_ev * h_ev + (1.0 - u_ev) * c_ev
    o_ref[:, H:] = u_od * h_od + (1.0 - u_od) * c_od


# ---------------------------------------------------------------------------
# Wrapper
# ---------------------------------------------------------------------------

def _pick_batch_tile(batch, num_nodes, hidden_dim):
    """Largest divisor of `batch` whose block stays around ~1 MiB of
    hidden-state bytes, keeping block row counts 16-aligned (or the full
    array) so both node-row and pair-row blocks satisfy the (8, 128) rule."""
    target_rows = max(1024, (1 << 20) // (4 * (2 * hidden_dim + 2)))
    valid = [tb for tb in range(1, batch + 1)
             if batch % tb == 0
             and (tb == batch or (tb * num_nodes) % 16 == 0)]
    under = [tb for tb in valid if tb * num_nodes <= max(target_rows, num_nodes)]
    return max(under) if under else min(valid)


def gru_cell(x, hidden_state, params):
    """Fused Pallas forward of GRUCell.  Returns (new_hidden, new_hidden)."""
    w1, b1 = params["w1"], params["b1"]          # (H+1, 2H), (2H,)
    w2, b2 = params["w2"], params["b2"]          # (H+1, H),  (H,)

    B, N = x.shape
    H = w2.shape[1]
    assert w1.shape == (H + 1, 2 * H) and w2.shape == (H + 1, H)
    assert hidden_state.shape == (B, N * H)
    # TODO(synk): odd num_nodes makes torch.chunk split one node's gate vector
    # across r and u; this kernel supports even num_nodes only.
    assert N % 2 == 0, "num_nodes must be even"

    f32 = jnp.float32
    x = x.astype(f32)
    hidden_state = hidden_state.astype(f32)

    # ---- free layout views (same HBM bytes, metadata reshapes only) --------
    x_node = x.reshape(B * N, 1)                   # matmul layout, one row per node
    x_pair = x.reshape(B * N // 2, 2)              # pair layout: 2 nodes per row (tiny)
    h_node = hidden_state.reshape(B * N, H)        # single h view: K = H on lanes

    # ---- tiny one-time weight prep (resident in VMEM for the whole grid) ---
    w1x = w1[0:1, :].astype(f32)                   # (1, 2H): row hit by the scalar input
    w1h = w1[1:, :].astype(f32)                    # (H, 2H)
    b1r = b1.reshape(1, 2 * H).astype(f32)
    w2x = w2[0:1, :].astype(f32)                   # (1, H)
    w2h = w2[1:, :].astype(f32)                    # (H, H)
    b2r = b2.reshape(1, H).astype(f32)

    # ---- tiling: 1-D parallel grid over groups of whole batch elements -----
    TB = _pick_batch_tile(B, N, H)
    grid = (B // TB,)
    R = TB * N            # node rows per block
    Q = R // 2            # pair rows per block

    def row_spec(shape):
        return pl.BlockSpec(shape, lambda i: (i, 0))

    def const_spec(shape):
        return pl.BlockSpec(shape, lambda i: (0, 0))

    # VMEM budget: double-buffered data blocks + in-kernel temporaries
    # (g, r/u, even/odd copies, c) + resident weights + headroom.
    in_bytes = 4 * (R * (H + 1) + Q * 2)
    out_bytes = 4 * Q * 2 * H
    tmp_bytes = 4 * R * 8 * H
    weight_bytes = 4 * (2 * H * (H + 2) + H * (H + 2))
    vmem_limit = int(min(48 * 2**20,
                         max(24 * 2**20,
                             2 * (in_bytes + out_bytes) + tmp_bytes
                             + weight_bytes + (4 << 20))))

    out_pair = pl.pallas_call(
        functools.partial(_fused_gru_cell_kernel, num_nodes=N),
        out_shape=jax.ShapeDtypeStruct((B * N // 2, 2 * H), f32),
        grid=grid,
        in_specs=[
            row_spec((R, 1)),              # x, node rows
            row_spec((Q, 2)),              # x, pair rows (tiny)
            row_spec((R, H)),              # h, node rows (single HBM read of h)
            const_spec((1, 2 * H)),        # w1x
            const_spec((H, 2 * H)),        # w1h
            const_spec((1, 2 * H)),        # b1
            const_spec((1, H)),            # w2x
            const_spec((H, H)),            # w2h
            const_spec((1, H)),            # b2
        ],
        out_specs=row_spec((Q, 2 * H)),
        compiler_params=pltpu.CompilerParams(
            dimension_semantics=("parallel",),
            vmem_limit_bytes=vmem_limit,
        ),
    )(x_node, x_pair, h_node, w1x, w1h, b1r, w2x, w2h, b2r)

    new_hidden = out_pair.reshape(B, N * H)
    return new_hidden, new_hidden


# ---------------------------------------------------------------------------
# Deterministic parameter init (matches GRUCell.__init__ shapes / init scheme)
# ---------------------------------------------------------------------------

def _xavier_uniform(key, shape):
    fan_in, fan_out = shape
    limit = (6.0 / (fan_in + fan_out)) ** 0.5
    return jax.random.uniform(key, shape, jnp.float32, -limit, limit)


def init_gru_cell_params(key, hidden_dim):
    k1, k2 = jax.random.split(key)
    return {
        # linear1: GRULinear(hidden_dim, 2*hidden_dim, bias=1.0)
        "w1": _xavier_uniform(k1, (hidden_dim + 1, 2 * hidden_dim)),
        "b1": jnp.full((2 * hidden_dim,), 1.0, jnp.float32),
        # linear2: GRULinear(hidden_dim, hidden_dim, bias=0.0)
        "w2": _xavier_uniform(k2, (hidden_dim + 1, hidden_dim)),
        "b2": jnp.zeros((hidden_dim,), jnp.float32),
    }


# ---------------------------------------------------------------------------
# Pure-JAX reference (mirrors the PyTorch code) for the correctness check
# ---------------------------------------------------------------------------

def _ref_gru_linear(x, h_flat, w, b):
    B, N = x.shape
    H = w.shape[0] - 1
    out_dim = w.shape[1]
    cat = jnp.concatenate([x.reshape(B, N, 1), h_flat.reshape(B, N, H)], axis=2)
    out = cat.reshape(-1, H + 1) @ w + b
    return out.reshape(B, N * out_dim)


def _ref_gru_cell(x, h_flat, params):
    B, N = x.shape
    H = params["w2"].shape[1]
    concat = jax.nn.sigmoid(_ref_gru_linear(x, h_flat, params["w1"], params["b1"]))
    r, u = concat[:, : N * H], concat[:, N * H:]
    c = jnp.tanh(_ref_gru_linear(x, r * h_flat, params["w2"], params["b2"]))
    return u * h_flat + (1.0 - u) * c


# ---------------------------------------------------------------------------

if __name__ == "__main__":
    B, N, H = 2, 16, 32  # batch, num_nodes, hidden_dim

    key = jax.random.PRNGKey(0)
    k_p, k_x, k_h = jax.random.split(key, 3)

    params = init_gru_cell_params(k_p, H)
    x = jax.random.normal(k_x, (B, N), jnp.float32)
    hidden = jax.random.normal(k_h, (B, N * H), jnp.float32)

    ref = _ref_gru_cell(x, hidden, params)

    gru_cell_jit = jax.jit(gru_cell)
    new_h, out = gru_cell_jit(x, hidden, params)
    new_h = jax.block_until_ready(new_h)

    assert new_h.shape == (B, N * H)
    assert out.shape == (B, N * H)
    assert jnp.allclose(new_h, ref, atol=1e-5, rtol=1e-5)

    print("KERNEL_OK")
</pallas_src>

<mosaic_0001>
module attributes {stable_mosaic.version = 11 : i64} {
  func.func @_fused_gru_cell_kernel(%arg0: i32, %arg1: memref<32x1xf32, #tpu.memory_space<vmem>>, %arg2: memref<16x2xf32, #tpu.memory_space<vmem>>, %arg3: memref<32x32xf32, #tpu.memory_space<vmem>>, %arg4: memref<1x64xf32, #tpu.memory_space<vmem>>, %arg5: memref<32x64xf32, #tpu.memory_space<vmem>>, %arg6: memref<1x64xf32, #tpu.memory_space<vmem>>, %arg7: memref<1x32xf32, #tpu.memory_space<vmem>>, %arg8: memref<32x32xf32, #tpu.memory_space<vmem>>, %arg9: memref<1x32xf32, #tpu.memory_space<vmem>>, %arg10: memref<16x64xf32, #tpu.memory_space<vmem>>) attributes {dimension_semantics = [#tpu.dimension_semantics<parallel>], iteration_bounds = array<i64: 1>, scalar_prefetch = 0 : i64, scratch_operands = 0 : i64, tpu.core_type = #tpu.core_type<tc>, window_params = [{transform_indices = @transform_0, window_bounds = array<i64: 32, 1>}, {transform_indices = @transform_1, window_bounds = array<i64: 16, 2>}, {transform_indices = @transform_2, window_bounds = array<i64: 32, 32>}, {pipeline_mode = #tpu.pipeline_mode<synchronous>, transform_indices = @transform_3, window_bounds = array<i64: 1, 64>}, {pipeline_mode = #tpu.pipeline_mode<synchronous>, transform_indices = @transform_4, window_bounds = array<i64: 32, 64>}, {pipeline_mode = #tpu.pipeline_mode<synchronous>, transform_indices = @transform_5, window_bounds = array<i64: 1, 64>}, {pipeline_mode = #tpu.pipeline_mode<synchronous>, transform_indices = @transform_6, window_bounds = array<i64: 1, 32>}, {pipeline_mode = #tpu.pipeline_mode<synchronous>, transform_indices = @transform_7, window_bounds = array<i64: 32, 32>}, {pipeline_mode = #tpu.pipeline_mode<synchronous>, transform_indices = @transform_8, window_bounds = array<i64: 1, 32>}, {transform_indices = @transform_9, window_bounds = array<i64: 16, 64>}]} {
    %c0 = arith.constant 0 : index
    %c0_0 = arith.constant 0 : index
    %0 = vector.load %arg1[%c0, %c0_0] : memref<32x1xf32, #tpu.memory_space<vmem>>, vector<32x1xf32>
    %c0_1 = arith.constant 0 : index
    %c0_2 = arith.constant 0 : index
    %1 = vector.load %arg3[%c0_1, %c0_2] : memref<32x32xf32, #tpu.memory_space<vmem>>, vector<32x32xf32>
    %c0_3 = arith.constant 0 : index
    %c0_4 = arith.constant 0 : index
    %2 = vector.load %arg4[%c0_3, %c0_4] : memref<1x64xf32, #tpu.memory_space<vmem>>, vector<1x64xf32>
    %3 = vector.broadcast %0 : vector<32x1xf32> to vector<32x64xf32>
    %4 = vector.broadcast %2 : vector<1x64xf32> to vector<32x64xf32>
    %5 = arith.mulf %3, %4 : vector<32x64xf32>
    %c0_5 = arith.constant 0 : index
    %c0_6 = arith.constant 0 : index
    %6 = vector.load %arg5[%c0_5, %c0_6] : memref<32x64xf32, #tpu.memory_space<vmem>>, vector<32x64xf32>
    %cst = arith.constant dense<0.000000e+00> : vector<32x64xf32>
    %7 = tpu.matmul %1, %6, %cst {dimension_numbers = #tpu.dot_dimension_numbers<[1], [0], [0], [1], [0, 0, 1, 1], [], []>} : vector<32x32xf32>, vector<32x64xf32>, vector<32x64xf32> -> vector<32x64xf32>
    %8 = arith.addf %5, %7 : vector<32x64xf32>
    %c0_7 = arith.constant 0 : index
    %c0_8 = arith.constant 0 : index
    %9 = vector.load %arg6[%c0_7, %c0_8] : memref<1x64xf32, #tpu.memory_space<vmem>>, vector<1x64xf32>
    %10 = vector.broadcast %9 : vector<1x64xf32> to vector<32x64xf32>
    %11 = arith.addf %8, %10 : vector<32x64xf32>
    %12 = arith.negf %11 : vector<32x64xf32>
    %13 = math.exp %12 : vector<32x64xf32>
    %cst_9 = arith.constant 1.000000e+00 : f32
    %14 = vector.broadcast %cst_9 : f32 to vector<32x64xf32>
    %15 = arith.addf %14, %13 : vector<32x64xf32>
    %16 = arith.divf %14, %15 : vector<32x64xf32>
    %17 = vector.shape_cast %16 : vector<32x64xf32> to vector<2x16x64xf32>
    %18 = vector.extract_strided_slice %17 {offsets = [0, 0, 0], sizes = [2, 8, 64], strides = [1, 1, 1]} : vector<2x16x64xf32> to vector<2x8x64xf32>
    %19 = vector.shape_cast %18 : vector<2x8x64xf32> to vector<16x64xf32>
    %20 = vector.extract_strided_slice %17 {offsets = [0, 8, 0], sizes = [2, 8, 64], strides = [1, 1, 1]} : vector<2x16x64xf32> to vector<2x8x64xf32>
    %21 = vector.shape_cast %20 : vector<2x8x64xf32> to vector<16x64xf32>
    %c0_10 = arith.constant 0 : index
    %c0_11 = arith.constant 0 : index
    %22 = tpu.strided_load %arg3[%c0_10, %c0_11] {strides = array<i32: 2, 1>} : memref<32x32xf32, #tpu.memory_space<vmem>>, vector<16x32xf32>
    %c1 = arith.constant 1 : index
    %c0_12 = arith.constant 0 : index
    %23 = tpu.strided_load %arg3[%c1, %c0_12] {strides = array<i32: 2, 1>} : memref<32x32xf32, #tpu.memory_space<vmem>>, vector<16x32xf32>
    %c0_13 = arith.constant 0 : index
    %c0_14 = arith.constant 0 : index
    %24 = vector.load %arg2[%c0_13, %c0_14] : memref<16x2xf32, #tpu.memory_space<vmem>>, vector<16x2xf32>
    %c0_15 = arith.constant 0 : index
    %c0_16 = arith.constant 0 : index
    %25 = vector.load %arg7[%c0_15, %c0_16] : memref<1x32xf32, #tpu.memory_space<vmem>>, vector<1x32xf32>
    %c0_17 = arith.constant 0 : index
    %c0_18 = arith.constant 0 : index
    %26 = vector.load %arg8[%c0_17, %c0_18] : memref<32x32xf32, #tpu.memory_space<vmem>>, vector<32x32xf32>
    %c0_19 = arith.constant 0 : index
    %c0_20 = arith.constant 0 : index
    %27 = vector.load %arg9[%c0_19, %c0_20] : memref<1x32xf32, #tpu.memory_space<vmem>>, vector<1x32xf32>
    %28 = vector.extract_strided_slice %19 {offsets = [0, 0], sizes = [16, 32], strides = [1, 1]} : vector<16x64xf32> to vector<16x32xf32>
    %29 = arith.mulf %28, %22 : vector<16x32xf32>
    %30 = vector.extract_strided_slice %19 {offsets = [0, 32], sizes = [16, 32], strides = [1, 1]} : vector<16x64xf32> to vector<16x32xf32>
    %31 = arith.mulf %30, %23 : vector<16x32xf32>
    %32 = vector.extract_strided_slice %24 {offsets = [0, 0], sizes = [16, 1], strides = [1, 1]} : vector<16x2xf32> to vector<16x1xf32>
    %33 = vector.broadcast %32 : vector<16x1xf32> to vector<16x32xf32>
    %34 = vector.broadcast %25 : vector<1x32xf32> to vector<16x32xf32>
    %35 = arith.mulf %33, %34 : vector<16x32xf32>
    %cst_21 = arith.constant dense<0.000000e+00> : vector<16x32xf32>
    %36 = tpu.matmul %29, %26, %cst_21 {dimension_numbers = #tpu.dot_dimension_numbers<[1], [0], [0], [1], [0, 0, 1, 1], [], []>} : vector<16x32xf32>, vector<32x32xf32>, vector<16x32xf32> -> vector<16x32xf32>
    %37 = arith.addf %35, %36 : vector<16x32xf32>
    %38 = vector.broadcast %27 : vector<1x32xf32> to vector<16x32xf32>
    %39 = arith.addf %37, %38 : vector<16x32xf32>
    %40 = math.tanh %39 : vector<16x32xf32>
    %41 = vector.extract_strided_slice %24 {offsets = [0, 1], sizes = [16, 1], strides = [1, 1]} : vector<16x2xf32> to vector<16x1xf32>
    %42 = vector.broadcast %41 : vector<16x1xf32> to vector<16x32xf32>
    %43 = vector.broadcast %25 : vector<1x32xf32> to vector<16x32xf32>
    %44 = arith.mulf %42, %43 : vector<16x32xf32>
    %cst_22 = arith.constant dense<0.000000e+00> : vector<16x32xf32>
    %45 = tpu.matmul %31, %26, %cst_22 {dimension_numbers = #tpu.dot_dimension_numbers<[1], [0], [0], [1], [0, 0, 1, 1], [], []>} : vector<16x32xf32>, vector<32x32xf32>, vector<16x32xf32> -> vector<16x32xf32>
    %46 = arith.addf %44, %45 : vector<16x32xf32>
    %47 = vector.broadcast %27 : vector<1x32xf32> to vector<16x32xf32>
    %48 = arith.addf %46, %47 : vector<16x32xf32>
    %49 = math.tanh %48 : vector<16x32xf32>
    %50 = vector.extract_strided_slice %21 {offsets = [0, 0], sizes = [16, 32], strides = [1, 1]} : vector<16x64xf32> to vector<16x32xf32>
    %51 = vector.extract_strided_slice %21 {offsets = [0, 32], sizes = [16, 32], strides = [1, 1]} : vector<16x64xf32> to vector<16x32xf32>
    %52 = arith.mulf %50, %22 : vector<16x32xf32>
    %cst_23 = arith.constant 1.000000e+00 : f32
    %53 = vector.broadcast %cst_23 : f32 to vector<16x32xf32>
    %54 = arith.subf %53, %50 : vector<16x32xf32>
    %55 = arith.mulf %54, %40 : vector<16x32xf32>
    %56 = arith.addf %52, %55 : vector<16x32xf32>
    %c0_24 = arith.constant 0 : index
    %c0_25 = arith.constant 0 : index
    %57 = vector.load %arg10[%c0_24, %c0_25] : memref<16x64xf32, #tpu.memory_space<vmem>>, vector<16x32xf32>
    tpu.vector_store %arg10[%c0_24, %c0_25], %56 {strides = array<i32>} : memref<16x64xf32, #tpu.memory_space<vmem>>, vector<16x32xf32>,
    %58 = arith.mulf %51, %23 : vector<16x32xf32>
    %cst_26 = arith.constant 1.000000e+00 : f32
    %59 = vector.broadcast %cst_26 : f32 to vector<16x32xf32>
    %60 = arith.subf %59, %51 : vector<16x32xf32>
    %61 = arith.mulf %60, %49 : vector<16x32xf32>
    %62 = arith.addf %58, %61 : vector<16x32xf32>
    %c0_27 = arith.constant 0 : index
    %c32 = arith.constant 32 : index
    %63 = vector.load %arg10[%c0_27, %c32] : memref<16x64xf32, #tpu.memory_space<vmem>>, vector<16x32xf32>
    tpu.vector_store %arg10[%c0_27, %c32], %62 {strides = array<i32>} : memref<16x64xf32, #tpu.memory_space<vmem>>, vector<16x32xf32>,
    return
  }
  func.func @transform_0(%arg0: i32) -> (i32, i32) {
    %c0_i32 = arith.constant 0 : i32
    %c0_i32_0 = arith.constant 0 : i32
    return %arg0, %c0_i32 : i32, i32
  }
  func.func @transform_1(%arg0: i32) -> (i32, i32) {
    %c0_i32 = arith.constant 0 : i32
    %c0_i32_0 = arith.constant 0 : i32
    return %arg0, %c0_i32 : i32, i32
  }
  func.func @transform_2(%arg0: i32) -> (i32, i32) {
    %c0_i32 = arith.constant 0 : i32
    %c0_i32_0 = arith.constant 0 : i32
    return %arg0, %c0_i32 : i32, i32
  }
  func.func @transform_3(%arg0: i32) -> (i32, i32) {
    %c0_i32 = arith.constant 0 : i32
    %c0_i32_0 = arith.constant 0 : i32
    %c0_i32_1 = arith.constant 0 : i32
    return %c0_i32, %c0_i32_0 : i32, i32
  }
  func.func @transform_4(%arg0: i32) -> (i32, i32) {
    %c0_i32 = arith.constant 0 : i32
    %c0_i32_0 = arith.constant 0 : i32
    %c0_i32_1 = arith.constant 0 : i32
    return %c0_i32, %c0_i32_0 : i32, i32
  }
  func.func @transform_5(%arg0: i32) -> (i32, i32) {
    %c0_i32 = arith.constant 0 : i32
    %c0_i32_0 = arith.constant 0 : i32
    %c0_i32_1 = arith.constant 0 : i32
    return %c0_i32, %c0_i32_0 : i32, i32
  }
  func.func @transform_6(%arg0: i32) -> (i32, i32) {
    %c0_i32 = arith.constant 0 : i32
    %c0_i32_0 = arith.constant 0 : i32
    %c0_i32_1 = arith.constant 0 : i32
    return %c0_i32, %c0_i32_0 : i32, i32
  }
  func.func @transform_7(%arg0: i32) -> (i32, i32) {
    %c0_i32 = arith.constant 0 : i32
    %c0_i32_0 = arith.constant 0 : i32
    %c0_i32_1 = arith.constant 0 : i32
    return %c0_i32, %c0_i32_0 : i32, i32
  }
  func.func @transform_8(%arg0: i32) -> (i32, i32) {
    %c0_i32 = arith.constant 0 : i32
    %c0_i32_0 = arith.constant 0 : i32
    %c0_i32_1 = arith.constant 0 : i32
    return %c0_i32, %c0_i32_0 : i32, i32
  }
  func.func @transform_9(%arg0: i32) -> (i32, i32) {
    %c0_i32 = arith.constant 0 : i32
    %c0_i32_0 = arith.constant 0 : i32
    return %arg0, %c0_i32 : i32, i32
  }
}

</mosaic_0001>

<bundles_post_ra>
// kernel: gru_cell.1
= control target key start
LH: loop header
LB: loop body
LE: loop exit
PB: predicated region body
PF: predicated region fallthrough
CT: control target
= control target key end

     0   :  { %vm75_vm0 = vcmask 261120   ;;  %v591_v2 = vmov 0   ;;  %s592_s25 = smov 32   ;;  %v593_v17 = vmov 1   ;;  %s594_s26 = smov 96   ;;  %vm475_vm1 = vcmask 523520   ;;  %s783_s4 = inlined_call_operand.vmem [shape: f32[32,64], index: 4, kind: input, shape index: {}]   ;;  %s784_s2 = inlined_call_operand.vmem [shape: f32[32,32], index: 2, kind: input, shape index: {}]   ;;  %s785_s0 = inlined_call_operand.vmem [shape: f32[32,1], index: 0, kind: input, shape index: {}]   ;;  %s786_s7 = inlined_call_operand.vmem [shape: f32[32,32], index: 7, kind: input, shape index: {}]   ;;  %s787_s3 = inlined_call_operand.vmem [shape: f32[1,64], index: 3, kind: input, shape index: {}]   ;;  %s788_s5 = inlined_call_operand.vmem [shape: f32[1,64], index: 5, kind: input, shape index: {}]   ;;  %s789_s1 = inlined_call_operand.vmem [shape: f32[16,2], index: 1, kind: input, shape index: {}]   ;;  %s790_s6 = inlined_call_operand.vmem [shape: f32[1,32], index: 6, kind: input, shape index: {}]   ;;  %s791_s8 = inlined_call_operand.vmem [shape: f32[1,32], index: 8, kind: input, shape index: {}]   ;;  %s792_s9 = inlined_call_operand.vmem [shape: f32[16,64], index: 9, kind: output, shape index: {}]  }
   0x1   :  { %v74_v0 = vld [vmem:[%s783_s4 + $0x18] sm:$0xff]  ;;  %v73_v1 = vld [vmem:[%s783_s4 + $0x10] sm:$0xff]  ;;  %561 = vset.pattern.permute.xlu0 %v591_v2  ;;  %v36_v3 = vld [vmem:[%s784_s2] sm:$0xff]  ;;  %563 = vset.pattern.permute.xlu1 %v593_v17 }
   0x2   :  { %521 = vmatprep.subr.mxu0 %v74_v0  ;;  %v72_v4 = vld [vmem:[%s783_s4 + $0x8] sm:$0xff]  ;;  %529 = vmatprep.mubr.msk.f32.mxu0 %vm75_vm0, %v36_v3  ;;  %v32_v5 = vld [vmem:[%s785_s0] sm:$0xff]  ;;  %v34_v8 = vld [vmem:[%s785_s0 + $0x10] sm:$0xff] }
   0x3   :  { %522 = vmatpush3.msra.mxu0 %v74_v0  ;;  %43 = vperm.xlu0 %561, %v32_v5   ;;  %v493_v6 = vld [vmem:[%s784_s2 + $0x1] ss:$2 sm:$0xff]  ;;  %v494_v9 = vld [vmem:[%s784_s2 + $0x11] ss:$2 sm:$0xff]  ;;  %v703_v18 = vld [vmem:[%s787_s3] ss:$0 sm:$0xff] }
   0x4   :  { %523 = vmatprep.subr.mxu0 %v73_v1  ;;  %v71_v7 = vld [vmem:[%s783_s4] sm:$0xff]  ;;  %231 = vrot.lane.b32.xlu1 %v493_v6, %s592_s25  ;;  %v37_v10 = vld [vmem:[%s784_s2 + $0x8] sm:$0xff]  ;;  %v38_v11 = vld [vmem:[%s784_s2 + $0x10] sm:$0xff] }
   0x5   :  { %524 = vmatpush3.msra.mxu0 %v73_v1  ;;  %v39_v12 = vld [vmem:[%s784_s2 + $0x18] sm:$0xff]  ;;  %v224_v14 = vld [vmem:[%s786_s7 + $0x10] sm:$0xff]  ;;  %v223_v15 = vld [vmem:[%s786_s7 + $0x8] sm:$0xff] }
   0x6   :  { %525 = vmatprep.subr.mxu0 %v72_v4  ;;  %v225_v13 = vld [vmem:[%s786_s7 + $0x18] sm:$0xff]  ;;  %v222_v16 = vld [vmem:[%s786_s7] sm:$0xff]  ;;  %v220_v49 = vld [vmem:[%s789_s1 + $0x8] sm:$0xff] }
   0x7   :  { %526 = vmatpush3.msra.mxu0 %v72_v4  ;;  %53 = vperm.xlu0 %561, %v34_v8   ;;  %v711_v24 = vld [vmem:[%s788_s5] ss:$0 sm:$0xff]  ;;  %v730_v44 = vld [vmem:[%s784_s2 + $0x10] ss:$2 sm:$0xff]  ;;  %v33_v51 = vld [vmem:[%s785_s0 + $0x8] sm:$0xff] }
   0x8   :  { %527 = vmatprep.subr.mxu0 %v71_v7  ;;  %233 = vrot.lane.b32.xlu1 %v494_v9, %s592_s25  ;;  %v721_v39 = vld [vmem:[%s784_s2] ss:$2 sm:$0xff]  ;;  %v35_v50 = vld [vmem:[%s785_s0 + $0x18] sm:$0xff] }
   0x9   :  { %528 = vmatpush3.msra.mxu0 %v71_v7  ;;  %535 = vmatprep.subr.mxu1 %v225_v13  ;;  %v219_v46 = vld [vmem:[%s789_s1] sm:$0xff] }
   0xa   :  { %530 = vmatmul.mubr.msk.f32.vlgmr.msra.gmra.mxu0 %vm75_vm0, %v37_v10  ;;  %546 = vmatprep.subr.mxu0 %v225_v13  ;;  %v495_v54 = vld [vmem:[%s790_s6] ss:$0 sm:$0xff] }
   0xb   :  { %532 = vmatprep.mubr.msk.f32.mxu0 %vm75_vm0, %v38_v11  ;;  %536 = vmatpush3.msra.mxu1 %v225_v13 }
   0xc   :  { %547 = vmatpush3.msra.mxu0 %v225_v13  ;;  %537 = vmatprep.subr.mxu1 %v224_v14  ;;  %v498_v13 = vld [vmem:[%s791_s8] ss:$0 sm:$0xff] }
   0xd   :  { %548 = vmatprep.subr.mxu0 %v224_v14  ;;  %538 = vmatpush3.msra.mxu1 %v224_v14 }
   0xe   :  { %533 = vmatmul.mubr.msk.f32.gmra.mxu0 %vm75_vm0, %v39_v12  ;;  %539 = vmatprep.subr.mxu1 %v223_v15 }
   0xf   :  { %549 = vmatpush3.msra.mxu0 %v224_v14  ;;  %540 = vmatpush3.msra.mxu1 %v223_v15 }
  0x10   :  { %550 = vmatprep.subr.mxu0 %v223_v15  ;;  %541 = vmatprep.subr.mxu1 %v222_v16 }
  0x11   :  { %551 = vmatpush3.msra.mxu0 %v223_v15  ;;  %542 = vmatpush3.msra.mxu1 %v222_v16 }
  0x12   :  { %552 = vmatprep.subr.mxu0 %v222_v16  ;;  %562 = vset.pattern.permute.xlu0 %v593_v17 }
  0x13   :  { %553 = vmatpush3.msra.mxu0 %v222_v16 }
  0x76   :  { %v716_v38 = vpop.permute.xlu1 %231 }
  0x7a   :  { %v725_v43 = vpop.permute.xlu1 %233 }
  0x7e   :  { %v44_v19 = vpop.permute.xlu0 %43 }
  0x7f   :  { %v67_v20 = vmul.f32 %v703_v18, %v44_v19 }
  0x82   :  { %v54_v22 = vpop.permute.xlu0 %53 }
  0x83   :  { %v69_v27 = vmul.f32 %v703_v18, %v54_v22 }
  0xca   :  { %v706_v21 = vpop.f32.mrf.mxu0 }
  0xcc   :  { %v154_v23 = vpop.f32.mrf.mxu0 }
  0xcd   :  { %v173_v25 = vadd.f32 %v154_v23, %v67_v20 }
  0xce   :  { %v534_v26 = vpop.f32.mrf.mxu0 }
  0xcf   :  { %v184_v28 = vadd.f32 %v711_v24, %v173_v25 }
  0xd0   :  { %v164_v29 = vpop.f32.mrf.mxu0 }
  0xd1   :  { %v488_v30 = vmul.f32 -1.442695, %v184_v28  ;;  %v175_v31 = vadd.f32 %v164_v29, %v69_v27 }
  0xd3   :  { %567 = vpow2.f32 %v488_v30  ;;  %v186_v32 = vadd.f32 %v711_v24, %v175_v31 }
  0xd5   :  { %v490_v33 = vmul.f32 -1.442695, %v186_v32 }
  0xd7   :  { %569 = vpow2.f32 %v490_v33 }
  0xe0   :  { %v568_v34 = vpop.eup %567 }
  0xe1   :  { %v200_v35 = vadd.f32 1.0, %v568_v34 }
  0xe3   :  { %571 = vrcp.f32 %v200_v35 }
  0xe4   :  { %v570_v36 = vpop.eup %569 }
  0xe5   :  { %v202_v37 = vadd.f32 1.0, %v570_v36 }
  0xe7   :  { %573 = vrcp.f32 %v202_v37 }
  0xf0   :  { %v572_v40 = vpop.eup %571 }
  0xf1   :  { %v237_v41 = vmul.f32 %v572_v40, %v716_v38  ;;  %v227_v42 = vmul.f32 %v572_v40, %v721_v39 }
  0xf3   :  { %362 = vrot.lane.b32.xlu0 %v237_v41, %s594_s26  ;;  %543 = vmatprep.mubr.msk.f32.mxu1 %vm75_vm0, %v227_v42 }
  0xf4   :  { %v574_v45 = vpop.eup %573 }
  0xf5   :  { %v238_v47 = vmul.f32 %v574_v45, %v725_v43  ;;  %v228_v48 = vmul.f32 %v574_v45, %v730_v44 }
  0xf7   :  { %351 = vperm.xlu0 %562, %v219_v46   ;;  %364 = vrot.lane.b32.xlu1 %v238_v47, %s594_s26 }
  0xf8   :  { %544 = vmatmul.mubr.msk.f32.vlgmr.msra.gmra.mxu1 %vm75_vm0, %v228_v48 }
  0xfb   :  { %565 = vset.pattern.permute.xlu0 %v591_v2  ;;  %355 = vperm.xlu1 %563, %v220_v49  }
  0xfc   :  { %58 = vperm.xlu0 %565, %v35_v50  }
  0xff   :  { %564 = vset.pattern.permute.xlu1 %v591_v2 }
 0x100   :  { %48 = vperm.xlu1 %564, %v33_v51   ;;  %566 = vset.pattern.permute.xlu0 %v593_v17 }
 0x104   :  { %241 = vperm.xlu1 %564, %v219_v46  }
 0x108   :  { %246 = vperm.xlu1 %564, %v220_v49  }
 0x165   :  { %v363_v52 = vpop.permute.xlu0 %362 }
 0x166   :  { %554 = vmatprep.mubr.msk.f32.mxu0 %vm75_vm0, %v363_v52 }
 0x169   :  { %v365_v53 = vpop.permute.xlu1 %364 }
 0x16a   :  { %555 = vmatmul.mubr.msk.f32.vlgmr.msra.gmra.mxu0 %vm75_vm0, %v365_v53 }
 0x172   :  { %v352_v55 = vpop.permute.xlu0 %351 }
 0x173   :  { %v358_v56 = vmul.f32 %v495_v54, %v352_v55 }
 0x176   :  { %v356_v57 = vpop.permute.xlu1 %355 }
 0x177   :  { %v359_v58 = vmul.f32 %v495_v54, %v356_v57  ;;  %v59_v59 = vpop.permute.xlu0 %58 }
 0x178   :  { %v70_v61 = vmul.f32 %v703_v18, %v59_v59 }
 0x17a   :  { %v176_v63 = vadd.f32 %v534_v26, %v70_v61 }
 0x17b   :  { %v49_v60 = vpop.permute.xlu1 %48 }
 0x17c   :  { %v68_v62 = vmul.f32 %v703_v18, %v49_v60  ;;  %v187_v1 = vadd.f32 %v711_v24, %v176_v63 }
 0x17e   :  { %v174_v0 = vadd.f32 %v706_v21, %v68_v62  ;;  %v491_v3 = vmul.f32 -1.442695, %v187_v1 }
 0x17f   :  { %v242_v5 = vpop.permute.xlu1 %241 }
 0x180   :  { %v185_v2 = vadd.f32 %v711_v24, %v174_v0  ;;  %575 = vpow2.f32 %v491_v3  ;;  %v255_v12 = vmul.f32 %v495_v54, %v242_v5 }
 0x182   :  { %v489_v4 = vmul.f32 -1.442695, %v185_v2 }
 0x183   :  { %v247_v7 = vpop.permute.xlu1 %246 }
 0x184   :  { %577 = vpow2.f32 %v489_v4  ;;  %v256_v10 = vmul.f32 %v495_v54, %v247_v7 }
 0x18d   :  { %v576_v6 = vpop.eup %575 }
 0x18e   :  { %v203_v9 = vadd.f32 1.0, %v576_v6 }
 0x190   :  { %579 = vrcp.f32 %v203_v9 }
 0x191   :  { %v578_v8 = vpop.eup %577 }
 0x192   :  { %v201_v11 = vadd.f32 1.0, %v578_v8 }
 0x194   :  { %581 = vrcp.f32 %v201_v11 }
 0x19d   :  { %v580_v20 = vpop.eup %579 }
 0x19e   :  { %v454_v22 = vsub.f32 1.0, %v580_v20  ;;  %v452_v24 = vmul.f32 %v580_v20, %v730_v44  ;;  %v462_v42 = vmul.f32 %v580_v20, %v725_v43 }
 0x1a1   :  { %v582_v21 = vpop.eup %581 }
 0x1a2   :  { %v453_v26 = vsub.f32 1.0, %v582_v21  ;;  %v451_v29 = vmul.f32 %v582_v21, %v721_v39  ;;  %v461_v47 = vmul.f32 %v582_v21, %v716_v38 }
 0x1b8   :  { %v545_v14 = vpop.f32.mrf.mxu1 }
 0x1b9   :  { %v339_v15 = vadd.f32 %v545_v14, %v256_v10 }
 0x1ba   :  { %v329_v16 = vpop.f32.mrf.mxu1 }
 0x1bb   :  { %v347_v17 = vadd.f32 %v498_v13, %v339_v15  ;;  %v338_v18 = vadd.f32 %v329_v16, %v255_v12 }
 0x1bd   :  { %583 = vtanh.f32 %v347_v17  ;;  %v346_v19 = vadd.f32 %v498_v13, %v338_v18 }
 0x1bf   :  { %585 = vtanh.f32 %v346_v19 }
 0x1ca   :  { %v584_v23 = vpop.eup %583 }
 0x1cb   :  { %v456_v25 = vmul.f32 %v584_v23, %v454_v22 }
 0x1cc   :  { %v586_v27 = vpop.eup %585 }
 0x1cd   :  { %v458_v28 = vadd.f32 %v456_v25, %v452_v24  ;;  %v455_v30 = vmul.f32 %v586_v27, %v453_v26 }
 0x1cf   :  { %460 = vst.msk [vmem:[%s792_s9 + $0x8] sm:$0xff] %vm75_vm0, %v458_v28  ;;  %v457_v31 = vadd.f32 %v455_v30, %v451_v29 }
 0x1d1   :  { %459 = vst.msk [vmem:[%s792_s9] sm:$0xff] %vm75_vm0, %v457_v31 }
 0x22a   :  { %v556_v32 = vpop.f32.mrf.mxu0 }
 0x22b   :  { %v446_v33 = vadd.f32 %v556_v32, %v359_v58 }
 0x22c   :  { %v436_v34 = vpop.f32.mrf.mxu0 }
 0x22d   :  { %v448_v35 = vadd.f32 %v498_v13, %v446_v33  ;;  %v445_v36 = vadd.f32 %v436_v34, %v358_v56 }
 0x22f   :  { %587 = vtanh.f32 %v448_v35  ;;  %v447_v37 = vadd.f32 %v498_v13, %v445_v36 }
 0x231   :  { %589 = vtanh.f32 %v447_v37 }
 0x23c   :  { %v588_v39 = vpop.eup %587 }
 0x23d   :  { %467 = vrot.lane.b32.xlu1 %v588_v39, %s592_s25 }
 0x23e   :  { %v590_v40 = vpop.eup %589 }
 0x23f   :  { %465 = vrot.lane.b32.xlu0 %v590_v40, %s592_s25 }
 0x2af   :  { %v468_v41 = vpop.permute.xlu1 %467 }
 0x2b0   :  { %v472_v44 = vmul.f32 %v468_v41, %v454_v22 }
 0x2b1   :  { %v466_v45 = vpop.permute.xlu0 %465 }
 0x2b2   :  { %v474_v46 = vadd.f32 %v472_v44, %v462_v42  ;;  %v471_v48 = vmul.f32 %v466_v45, %v453_v26 }
 0x2b4   :  { %477 = vst.msk [vmem:[%s792_s9 + $0x8] sm:$0xff] %vm475_vm1, %v474_v46  ;;  %v473_v49 = vadd.f32 %v471_v48, %v461_v47 }
 0x2b6   :  { %476 = vst.msk [vmem:[%s792_s9] sm:$0xff] %vm475_vm1, %v473_v49 }

</bundles_post_ra>
